<compile_context>
chip_gen: v7x
topology: tpu7x:2x2x1
jax: 0.10.0
libtpu: 0.0.40
codegen_flags: <defaults>
</compile_context>

<pallas_src>
import functools

import jax
import jax.numpy as jnp
from jax.experimental import pallas as pl
from jax.experimental.pallas import tpu as pltpu

TM = 512                      # M rows per generic-matmul tile
TN_MAX = 256                  # out-channel tile cap
TK_MAX = 2048                 # reduction tile cap
ROWBAND_X_BYTES = 4 << 20     # cap on the rowband input block
VMEM_LIMIT = 40 * 1024 * 1024


def _pick_tn(n):
    if n <= TN_MAX:
        return n
    best = None
    t = 128
    while t <= TN_MAX:
        if n % t == 0:
            best = t
        t += 128
    return best or n


def _pick_tk(k):
    if k <= TK_MAX:
        return k
    if k % 128 != 0:
        return k                      # full-K single step (never tile unaligned K)
    best = 128
    t = 128
    while t <= TK_MAX:
        if k % t == 0:
            best = t
        t += 128
    return best


def _pick_tr(r, ow, wp, kc):
    tr = max(1, min(r, max(1, 2048 // ow)))
    while tr > 1 and tr * wp * kc * 2 > ROWBAND_X_BYTES:
        tr = (tr + 1) // 2
    return tr


# ----------------------------------------------------------------------------
# Pallas kernels
# ----------------------------------------------------------------------------
def _mm_kernel_single(relu, has_res, x_ref, w_ref, b_ref, *rest):
    """One-shot matmul (K fits in a single block) + bias (+res) (+ReLU)."""
    if has_res:
        r_ref, o_ref = rest
    else:
        (o_ref,) = rest
        r_ref = None
    out = jnp.dot(x_ref[...], w_ref[...],
                  preferred_element_type=jnp.float32) + b_ref[...]
    if has_res:
        out = out + r_ref[...].astype(jnp.float32)
    if relu:
        out = jnp.maximum(out, 0.0)
    o_ref[...] = out.astype(o_ref.dtype)


def _mm_kernel_multi(relu, has_res, x_ref, w_ref, b_ref, *rest):
    """K-tiled matmul with f32 accumulator + bias (+res) (+ReLU) epilogue."""
    if has_res:
        r_ref, o_ref, acc_ref = rest
    else:
        o_ref, acc_ref = rest
        r_ref = None

    @pl.when(pl.program_id(2) == 0)
    def _():
        acc_ref[...] = jnp.zeros_like(acc_ref)

    acc_ref[...] += jnp.dot(x_ref[...], w_ref[...],
                            preferred_element_type=jnp.float32)

    @pl.when(pl.program_id(2) == pl.num_programs(2) - 1)
    def _():
        out = acc_ref[...] + b_ref[...]
        if has_res:
            out = out + r_ref[...].astype(jnp.float32)
        if relu:
            out = jnp.maximum(out, 0.0)
        o_ref[...] = out.astype(o_ref.dtype)


def _rowband_kernel(kw, ow, relu, has_res, x_ref, w_ref, b_ref, *rest):
    """Stride-1 conv over a full-width row band.

    x_ref : (TR, Wp, kh*Cin)  row-stacked input band (kernel-row taps pre-stacked
            along the channel axis); the kw column shifts are static in-VMEM reads.
    w_ref : (kw, kh*Cin, tn)  scale-folded bf16 weights.
    """
    if has_res:
        r_ref, o_ref = rest
    else:
        (o_ref,) = rest
        r_ref = None
    tr = x_ref.shape[0]
    kc = x_ref.shape[2]
    acc = None
    for j in range(kw):
        xs = x_ref[:, j:j + ow, :].reshape(tr * ow, kc)
        c = jnp.dot(xs, w_ref[j], preferred_element_type=jnp.float32)
        acc = c if acc is None else acc + c
    out = acc + b_ref[...]
    if has_res:
        out = out + r_ref[...].astype(jnp.float32)
    if relu:
        out = jnp.maximum(out, 0.0)
    o_ref[...] = out.astype(o_ref.dtype)


# ----------------------------------------------------------------------------
# Pallas wrappers
# ----------------------------------------------------------------------------
def matmul_bias(x, w, bias, *, relu=False, residual=None, out_dtype=jnp.bfloat16):
    """out = act(x @ w + bias [+ residual]).  w is pre-prepared bf16 (scale folded)."""
    m, k = x.shape
    k2, n = w.shape
    assert k == k2, (k, k2)
    tn = _pick_tn(n)
    tk = _pick_tk(k)
    nk = pl.cdiv(k, tk)
    xb = x.astype(jnp.bfloat16)
    wb = w.astype(jnp.bfloat16)
    b2 = bias.astype(jnp.float32).reshape(1, n)
    has_res = residual is not None
    grid_m = pl.cdiv(m, TM)
    grid_n = pl.cdiv(n, tn)

    if nk == 1:
        in_specs = [pl.BlockSpec((TM, k), lambda i, j: (i, 0)),
                    pl.BlockSpec((k, tn), lambda i, j: (0, j)),
                    pl.BlockSpec((1, tn), lambda i, j: (0, j))]
        args = [xb, wb, b2]
        if has_res:
            in_specs.append(pl.BlockSpec((TM, tn), lambda i, j: (i, j)))
            args.append(residual.astype(jnp.bfloat16))
        return pl.pallas_call(
            functools.partial(_mm_kernel_single, relu, has_res),
            out_shape=jax.ShapeDtypeStruct((m, n), out_dtype),
            grid=(grid_m, grid_n),
            in_specs=in_specs,
            out_specs=pl.BlockSpec((TM, tn), lambda i, j: (i, j)),
            compiler_params=pltpu.CompilerParams(
                dimension_semantics=("parallel", "parallel"),
                vmem_limit_bytes=VMEM_LIMIT),
        )(*args)

    in_specs = [pl.BlockSpec((TM, tk), lambda i, j, kk: (i, kk)),
                pl.BlockSpec((tk, tn), lambda i, j, kk: (kk, j)),
                pl.BlockSpec((1, tn), lambda i, j, kk: (0, j))]
    args = [xb, wb, b2]
    if has_res:
        in_specs.append(pl.BlockSpec((TM, tn), lambda i, j, kk: (i, j)))
        args.append(residual.astype(jnp.bfloat16))
    return pl.pallas_call(
        functools.partial(_mm_kernel_multi, relu, has_res),
        out_shape=jax.ShapeDtypeStruct((m, n), out_dtype),
        grid=(grid_m, grid_n, nk),
        in_specs=in_specs,
        out_specs=pl.BlockSpec((TM, tn), lambda i, j, kk: (i, j)),
        scratch_shapes=[pltpu.VMEM((TM, tn), jnp.float32)],
        compiler_params=pltpu.CompilerParams(
            dimension_semantics=("parallel", "parallel", "arbitrary"),
            vmem_limit_bytes=VMEM_LIMIT),
    )(*args)


def _conv2d_s1_rowband(x, w3, bias, *, kh, padding, relu, residual, out_dtype):
    """Stride-1 conv: kernel-row taps stacked along channels (kh-fold, not kh*kw),
    kernel-column shifts performed in-kernel on a full-width VMEM band."""
    kw, khcin, cout = w3.shape
    n, h, w, cin = x.shape
    p = padding
    oh = h + 2 * p - kh + 1
    ow = w + 2 * p - kw + 1
    xp = jnp.pad(x, ((0, 0), (p, p), (p, p), (0, 0)))
    wp = w + 2 * p                                        # == ow + kw - 1
    rows = jnp.concatenate([xp[:, dy:dy + oh, :, :] for dy in range(kh)], axis=-1)
    r_tot = n * oh
    rows = rows.reshape(r_tot, wp, khcin)
    m = r_tot * ow
    tn = _pick_tn(cout)
    tr = _pick_tr(r_tot, ow, wp, khcin)
    grid = (pl.cdiv(r_tot, tr), pl.cdiv(cout, tn))
    b2 = bias.astype(jnp.float32).reshape(1, cout)

    in_specs = [pl.BlockSpec((tr, wp, khcin), lambda i, j: (i, 0, 0)),
                pl.BlockSpec((kw, khcin, tn), lambda i, j: (0, 0, j)),
                pl.BlockSpec((1, tn), lambda i, j: (0, j))]
    args = [rows, w3, b2]
    has_res = residual is not None
    if has_res:
        in_specs.append(pl.BlockSpec((tr * ow, tn), lambda i, j: (i, j)))
        args.append(residual.reshape(m, cout).astype(jnp.bfloat16))

    out = pl.pallas_call(
        functools.partial(_rowband_kernel, kw, ow, relu, has_res),
        out_shape=jax.ShapeDtypeStruct((m, cout), out_dtype),
        grid=grid,
        in_specs=in_specs,
        out_specs=pl.BlockSpec((tr * ow, tn), lambda i, j: (i, j)),
        compiler_params=pltpu.CompilerParams(
            dimension_semantics=("parallel", "parallel"),
            vmem_limit_bytes=VMEM_LIMIT),
    )(*args)
    return out.reshape(n, oh, ow, cout)


def _im2col(x, kh, kw, stride, padding):
    """Fallback HBM im2col (strided / small-spatial convs only).
    K order is (kx, ky, ci) to match the (kw, kh*Cin, Cout) weight layout."""
    n, h, w, c = x.shape
    p = padding
    xp = jnp.pad(x, ((0, 0), (p, p), (p, p), (0, 0)))
    hp, wpd = h + 2 * p, w + 2 * p
    oh = (hp - kh) // stride + 1
    ow = (wpd - kw) // stride + 1
    cols = []
    for j in range(kw):
        for i in range(kh):
            cols.append(xp[:, i:i + stride * oh:stride, j:j + stride * ow:stride, :])
    patches = jnp.stack(cols, axis=3)                     # (n, oh, ow, kw*kh, c)
    return patches.reshape(n * oh * ow, kw * kh * c), oh, ow


def conv2d(x, w3, bias, *, stride=1, padding=0, relu=False, residual=None,
           out_dtype=jnp.bfloat16):
    """x: NHWC.  w3: (kw, kh*Cin, Cout) prepared bf16 weight (BN scale folded)."""
    kw, khcin, cout = w3.shape
    n, h, w, cin = x.shape
    kh = khcin // cin
    assert kh * cin == khcin, (kh, cin, khcin)
    xb = x.astype(jnp.bfloat16)

    if kh == 1 and kw == 1 and padding == 0:
        xs = xb[:, ::stride, ::stride, :] if stride > 1 else xb
        oh, ow = xs.shape[1], xs.shape[2]
        x2d = xs.reshape(n * oh * ow, cin)
        w2d = w3[0]
    else:
        oh = (h + 2 * padding - kh) // stride + 1
        ow = (w + 2 * padding - kw) // stride + 1
        if stride == 1 and ow % 8 == 0:
            return _conv2d_s1_rowband(xb, w3, bias, kh=kh, padding=padding,
                                      relu=relu, residual=residual,
                                      out_dtype=out_dtype)
        x2d, oh, ow = _im2col(xb, kh, kw, stride, padding)
        w2d = w3.reshape(kw * khcin, cout)

    res2d = None if residual is None else residual.reshape(n * oh * ow, cout)
    out = matmul_bias(x2d, w2d, bias, relu=relu, residual=res2d,
                      out_dtype=out_dtype)
    return out.reshape(n, oh, ow, cout)


def conv_transpose2d_k4s2p1(x, w3, bias, *, relu=False, out_dtype=jnp.bfloat16):
    """ConvTranspose2d(k=4,s=2,p=1): four 2x2 phase sub-kernels fused into one
    3x3-halo conv with 4*Cout channels; interleaved afterwards."""
    n, h, w, cin = x.shape
    cout = w3.shape[2] // 4
    y = conv2d(x, w3, bias, stride=1, padding=1, relu=relu, out_dtype=out_dtype)
    y = y.reshape(n, h, w, 2, 2, cout)
    return jnp.transpose(y, (0, 1, 3, 2, 4, 5)).reshape(n, 2 * h, 2 * w, cout)


def conv_transpose2d_k2s2(x, w_cat, bias4, *, relu=False, out_dtype=jnp.bfloat16):
    """ConvTranspose2d(k=2,s=2): pixel-shuffle of four 1x1 convs in one matmul."""
    n, h, w, cin = x.shape
    cout = w_cat.shape[1] // 4
    x2d = x.reshape(n * h * w, cin)
    out = matmul_bias(x2d, w_cat, bias4, relu=relu, out_dtype=out_dtype)
    out = out.reshape(n, h, w, 2, 2, cout)
    return jnp.transpose(out, (0, 1, 3, 2, 4, 5)).reshape(n, 2 * h, 2 * w, cout)


def maxpool2d_3x3_s2_p1(x):
    """3x3/s2/p1 max pool as 9 shifted strided reads (XLA glue; bandwidth-trivial)."""
    n, h, w, c = x.shape
    neg = jnp.finfo(x.dtype).min
    xp = jnp.pad(x, ((0, 0), (1, 1), (1, 1), (0, 0)), constant_values=neg)
    oh = (h + 2 - 3) // 2 + 1
    ow = (w + 2 - 3) // 2 + 1
    out = None
    for di in range(3):
        for dj in range(3):
            v = xp[:, di:di + 2 * oh - 1:2, dj:dj + 2 * ow - 1:2, :]
            out = v if out is None else jnp.maximum(out, v)
    return out


# ----------------------------------------------------------------------------
# One-time weight preparation (BN fold, layout transform, bf16 cast)
# ----------------------------------------------------------------------------
def bn_fuse(gamma, beta, mean, var, conv_bias=None, eps=1e-5):
    scale = gamma / jnp.sqrt(var + eps)
    bias = beta - mean * scale
    if conv_bias is not None:
        bias = bias + conv_bias.astype(jnp.float32) * scale
    return scale, bias


def prep_conv(w, scale, bias):
    """torch (Cout,Cin,kh,kw) conv weight -> (kw, kh*Cin, Cout) bf16, scale folded."""
    cout, cin, kh, kw = w.shape
    wf = w.astype(jnp.float32) * scale[:, None, None, None]
    w3 = jnp.transpose(wf, (3, 2, 1, 0)).reshape(kw, kh * cin, cout)
    return w3.astype(jnp.bfloat16), bias.astype(jnp.float32)


# halo-row/col r -> source ConvTranspose tap index for output parity dy (None = zero)
_DECONV_TAPS = {0: (3, 1, None), 1: (None, 2, 0)}


def prep_deconv_k4s2p1(wT, scale, bias):
    """torch (Cin,Cout,4,4) deconv weight -> fused (3, 3*Cin, 4*Cout) bf16 weight."""
    cin, cout = wT.shape[0], wT.shape[1]
    wf = wT.astype(jnp.float32) * scale[None, :, None, None]
    zero = jnp.zeros((cin, cout), jnp.float32)
    phase_blocks = []
    for dy in (0, 1):
        for dx in (0, 1):
            rows = []
            for r in range(3):
                ky = _DECONV_TAPS[dy][r]
                cols = []
                for c in range(3):
                    kx = _DECONV_TAPS[dx][c]
                    cols.append(zero if (ky is None or kx is None)
                                else wf[:, :, ky, kx])
                rows.append(jnp.stack(cols, axis=0))          # (3, cin, cout)
            phase_blocks.append(jnp.stack(rows, axis=0))      # (3, 3, cin, cout)
    kfull = jnp.concatenate(phase_blocks, axis=-1)            # (ky, kx, cin, 4*cout)
    w3 = jnp.transpose(kfull, (1, 0, 2, 3)).reshape(3, 3 * cin, 4 * cout)
    b4 = jnp.tile(bias.astype(jnp.float32), 4)
    return w3.astype(jnp.bfloat16), b4


def prep_deconv_k2s2(wT, scale, bias):
    cin, cout = wT.shape[0], wT.shape[1]
    wf = wT.astype(jnp.float32) * scale[None, :, None, None]
    w_cat = jnp.concatenate([wf[:, :, dy, dx] for dy in (0, 1) for dx in (0, 1)],
                            axis=1)                           # (cin, 4*cout)
    b4 = jnp.tile(bias.astype(jnp.float32), 4)
    return w_cat.astype(jnp.bfloat16), b4


# ----------------------------------------------------------------------------
# Deterministic synthetic parameters (shapes follow the module's __init__)
# ----------------------------------------------------------------------------
ENC_LAYERS = [(64, 64, 1, 2), (64, 128, 2, 2), (128, 256, 2, 2), (256, 512, 2, 2)]
DEC_LAYERS = [(512, 256, 2, 2), (512, 128, 2, 2), (256, 64, 2, 2), (128, 64, 1, 2)]


class PInit:
    def __init__(self, key):
        self.key = key

    def _k(self):
        self.key, k = jax.random.split(self.key)
        return k

    def conv_w(self, cout, cin, k):
        std = 1.0 / jnp.sqrt(float(cin * k * k))
        return std * jax.random.normal(self._k(), (cout, cin, k, k), jnp.float32)

    def convT_w(self, cin, cout, k):
        std = 1.0 / jnp.sqrt(float(cin * k * k))
        return std * jax.random.normal(self._k(), (cin, cout, k, k), jnp.float32)

    def bias(self, c):
        return 0.01 * jax.random.normal(self._k(), (c,), jnp.float32)

    def bn(self, c):
        g = 1.0 + 0.1 * jax.random.normal(self._k(), (c,), jnp.float32)
        b = 0.1 * jax.random.normal(self._k(), (c,), jnp.float32)
        m = 0.1 * jax.random.normal(self._k(), (c,), jnp.float32)
        v = 0.5 + jax.random.uniform(self._k(), (c,), jnp.float32)
        return (g, b, m, v)

    def linear(self, fin, fout):
        std = 1.0 / jnp.sqrt(float(fin))
        w = std * jax.random.normal(self._k(), (fout, fin), jnp.float32)
        b = 0.01 * jax.random.normal(self._k(), (fout,), jnp.float32)
        return (w, b)


def init_params(key, input_planes=3, out_planes=1):
    pi = PInit(key)
    P = {}
    P['conv1'] = pi.conv_w(64, input_planes, 7)
    P['bn1'] = pi.bn(64)
    enc = []
    for (inp, pls, stride, nb) in ENC_LAYERS:
        blocks = []
        for bi in range(nb):
            s = stride if bi == 0 else 1
            ip = inp if bi == 0 else pls
            bp = {'conv1': pi.conv_w(pls, ip, 3), 'bn1': pi.bn(pls),
                  'conv2': pi.conv_w(pls, pls, 3), 'bn2': pi.bn(pls)}
            if s != 1 or ip != pls:
                bp['down_w'] = pi.conv_w(pls, ip, 1)
                bp['down_bn'] = pi.bn(pls)
            blocks.append(bp)
        enc.append(blocks)
    P['enc'] = enc
    dec = []
    for (inp, pls, stride, nb) in DEC_LAYERS:
        blocks = []
        for bi in range(nb):
            s = stride if bi == 0 else 1
            ip = inp if bi == 0 else pls
            bp = {'bn1': pi.bn(pls), 'conv2': pi.conv_w(pls, pls, 3), 'bn2': pi.bn(pls)}
            if s == 1:
                bp['deconv1_w'] = pi.conv_w(pls, ip, 3)
            else:
                bp['deconv1_tw'] = pi.convT_w(ip, pls, 4)
            if s != 1 or ip != pls:
                if s == 1:
                    bp['up_w'] = pi.conv_w(pls, ip, 1)
                else:
                    bp['up_tw'] = pi.convT_w(ip, pls, 2)
                bp['up_bn'] = pi.bn(pls)
            blocks.append(bp)
        dec.append(blocks)
    P['dec'] = dec
    P['deconv1'] = pi.convT_w(128, 64, 4)
    P['dec_bn1'] = pi.bn(64)
    P['deconv2'] = pi.convT_w(64, out_planes, 4)
    P['mm_conv1_w'] = pi.conv_w(512, 512, 3)
    P['mm_conv1_b'] = pi.bias(512)
    P['mm_conv2_w'] = pi.conv_w(512, 512, 3)
    P['mm_conv2_b'] = pi.bias(512)
    P['mm_fc1'] = pi.linear(512, 256)
    P['mm_bn1'] = pi.bn(256)
    P['mm_fc2'] = pi.linear(256, 128)
    P['mm_bn2'] = pi.bn(128)
    P['mm_fc3'] = pi.linear(128, 2)
    return P


def prepare_params(P):
    """One-time host-side prep: BN folded into bf16 matmul-layout weights."""
    PP = {}
    s, b = bn_fuse(*P['bn1'])
    PP['stem'] = prep_conv(P['conv1'], s, b)
    enc = []
    for blocks in P['enc']:
        eb = []
        for bp in blocks:
            q = {}
            s1, b1 = bn_fuse(*bp['bn1'])
            q['conv1'] = prep_conv(bp['conv1'], s1, b1)
            s2, b2 = bn_fuse(*bp['bn2'])
            q['conv2'] = prep_conv(bp['conv2'], s2, b2)
            if 'down_w' in bp:
                sd, bd = bn_fuse(*bp['down_bn'])
                q['down'] = prep_conv(bp['down_w'], sd, bd)
            eb.append(q)
        enc.append(eb)
    PP['enc'] = enc
    dec = []
    for blocks in P['dec']:
        db = []
        for bp in blocks:
            q = {}
            s1, b1 = bn_fuse(*bp['bn1'])
            if 'deconv1_tw' in bp:
                q['deconv1_up'] = prep_deconv_k4s2p1(bp['deconv1_tw'], s1, b1)
            else:
                q['deconv1'] = prep_conv(bp['deconv1_w'], s1, b1)
            s2, b2 = bn_fuse(*bp['bn2'])
            q['conv2'] = prep_conv(bp['conv2'], s2, b2)
            if 'up_tw' in bp:
                su, bu = bn_fuse(*bp['up_bn'])
                q['up_k2s2'] = prep_deconv_k2s2(bp['up_tw'], su, bu)
            elif 'up_w' in bp:
                su, bu = bn_fuse(*bp['up_bn'])
                q['up_1x1'] = prep_conv(bp['up_w'], su, bu)
            db.append(q)
        dec.append(db)
    PP['dec'] = dec
    s, b = bn_fuse(*P['dec_bn1'])
    PP['deconv1'] = prep_deconv_k4s2p1(P['deconv1'], s, b)
    op = P['deconv2'].shape[1]
    PP['deconv2'] = prep_deconv_k4s2p1(P['deconv2'], jnp.ones((op,), jnp.float32),
                                       jnp.zeros((op,), jnp.float32))
    ones512 = jnp.ones((512,), jnp.float32)
    PP['mm_conv1'] = prep_conv(P['mm_conv1_w'], ones512, P['mm_conv1_b'])
    PP['mm_conv2'] = prep_conv(P['mm_conv2_w'], ones512, P['mm_conv2_b'])
    w1, bb1 = P['mm_fc1']
    s1, b1 = bn_fuse(*P['mm_bn1'], conv_bias=bb1)
    PP['fc1'] = (w1.T * s1[None, :], b1)
    w2, bb2 = P['mm_fc2']
    s2, b2 = bn_fuse(*P['mm_bn2'], conv_bias=bb2)
    PP['fc2'] = (w2.T * s2[None, :], b2)
    w3, bb3 = P['mm_fc3']
    PP['fc3'] = (w3.T, bb3.astype(jnp.float32))
    return PP


# ----------------------------------------------------------------------------
# Forward pass
# ----------------------------------------------------------------------------
def basic_block_fwd(x, q, stride):
    out = conv2d(x, *q['conv1'], stride=stride, padding=1, relu=True)
    if 'down' in q:
        res = conv2d(x, *q['down'], stride=stride, padding=0, relu=False)
    else:
        res = x
    # conv2 + BN2 + residual add + ReLU fused in one kernel epilogue
    return conv2d(out, *q['conv2'], stride=1, padding=1, relu=True, residual=res)


def rev_block_fwd(x, q):
    if 'deconv1_up' in q:
        out = conv_transpose2d_k4s2p1(x, *q['deconv1_up'], relu=True)
    else:
        out = conv2d(x, *q['deconv1'], stride=1, padding=1, relu=True)
    if 'up_k2s2' in q:
        res = conv_transpose2d_k2s2(x, *q['up_k2s2'], relu=False)
    elif 'up_1x1' in q:
        res = conv2d(x, *q['up_1x1'], stride=1, padding=0, relu=False)
    else:
        res = x
    return conv2d(out, *q['conv2'], stride=1, padding=1, relu=True, residual=res)


def uresnet_depth_predict_forward(PP, x_nchw):
    x = jnp.transpose(x_nchw, (0, 2, 3, 1)).astype(jnp.bfloat16)     # NHWC bf16

    # ---------------- encoder ----------------
    feat_maps = []
    feat = conv2d(x, *PP['stem'], stride=2, padding=3, relu=True)
    feat = maxpool2d_3x3_s2_p1(feat)
    feat_maps.append(feat)
    for li, blocks in enumerate(PP['enc']):
        for bi, q in enumerate(blocks):
            feat = basic_block_fwd(feat, q, ENC_LAYERS[li][2] if bi == 0 else 1)
        feat_maps.append(feat)
    encoder_out = feat_maps[-1]

    # ---------------- decoder (U-Net skips) ----------------
    xd = feat_maps[-1]
    for idx, blocks in enumerate(PP['dec']):
        for q in blocks:
            xd = rev_block_fwd(xd, q)
        skip = feat_maps[-(idx + 2)]
        assert skip.shape[1:3] == xd.shape[1:3]
        xd = jnp.concatenate([xd, skip.astype(xd.dtype)], axis=-1)    # torch.cat(dim=1)
    xd = conv_transpose2d_k4s2p1(xd, *PP['deconv1'], relu=True)
    xd = conv_transpose2d_k4s2p1(xd, *PP['deconv2'], relu=False,
                                 out_dtype=jnp.float32)
    depth = jnp.transpose(xd, (0, 3, 1, 2))                           # NCHW
    outputs = depth[:, None]                                          # unsqueeze(1)

    # ---------------- min/max head ----------------
    h = conv2d(encoder_out, *PP['mm_conv1'], stride=3, padding=1, relu=False)
    h = conv2d(h, *PP['mm_conv2'], stride=1, padding=0, relu=False)
    h = h.reshape(h.shape[0], -1).astype(jnp.float32)                 # ViewAsLinear
    w1, b1 = PP['fc1']
    h = jnp.maximum(h @ w1 + b1, 0.0)
    w2, b2 = PP['fc2']
    h = jnp.maximum(h @ w2 + b2, 0.0)
    w3, b3 = PP['fc3']
    predicted_min_max = h @ w3 + b3
    return outputs, predicted_min_max


# ----------------------------------------------------------------------------
# Numerical validation of the fused k4/s2/p1 deconv (review correctness concern)
# ----------------------------------------------------------------------------
def _check_deconv_k4s2p1():
    k1, k2 = jax.random.split(jax.random.PRNGKey(1))
    cin, cout, h = 8, 8, 8
    x = jax.random.normal(k1, (1, h, h, cin), jnp.float32)
    wT = 0.1 * jax.random.normal(k2, (cin, cout, 4, 4), jnp.float32)
    w3, b4 = prep_deconv_k4s2p1(wT, jnp.ones((cout,), jnp.float32),
                                jnp.zeros((cout,), jnp.float32))
    got = conv_transpose2d_k4s2p1(x, w3, b4, relu=False, out_dtype=jnp.float32)
    # direct PyTorch-semantics ConvTranspose2d(k=4, s=2, p=1) reference
    full = jnp.zeros((1, 2 * h + 2, 2 * h + 2, cout), jnp.float32)
    for ky in range(4):
        for kx in range(4):
            contrib = jnp.einsum('nhwc,cd->nhwd', x, wT[:, :, ky, kx])
            full = full.at[:, ky:ky + 2 * h:2, kx:kx + 2 * h:2, :].add(contrib)
    ref = full[:, 1:1 + 2 * h, 1:1 + 2 * h, :]
    err = float(jnp.max(jnp.abs(got - ref)))
    assert err < 0.08, f"fused k4s2p1 deconv mismatch: max abs err {err}"


# ----------------------------------------------------------------------------
if __name__ == "__main__":
    key = jax.random.PRNGKey(0)
    pkey, xkey = jax.random.split(key)
    raw_params = init_params(pkey, input_planes=3, out_planes=1)
    params = prepare_params(raw_params)

    _check_deconv_k4s2p1()

    # 224x224 is the minimal spatial size compatible with the min/max head
    # (encoder_out must be 7x7 so the two 3x3 convs collapse it to 1x1 -> 512 feats).
    x = jax.random.normal(xkey, (2, 3, 224, 224), jnp.float32)

    fwd = jax.jit(uresnet_depth_predict_forward)
    outputs, minmax = fwd(params, x)
    jax.block_until_ready((outputs, minmax))

    assert outputs.shape == (2, 1, 1, 224, 224), outputs.shape
    assert minmax.shape == (2, 2), minmax.shape
    assert bool(jnp.all(jnp.isfinite(outputs))) and bool(jnp.all(jnp.isfinite(minmax)))
    print("KERNEL_OK")
</pallas_src>

<mosaic_0001>
module attributes {stable_mosaic.version = 11 : i64} {
  func.func @_rowband_kernel(%arg0: i32, %arg1: i32, %arg2: memref<8x10x24xbf16, #tpu.memory_space<vmem>>, %arg3: memref<3x24x32xbf16, #tpu.memory_space<vmem>>, %arg4: memref<1x32xf32, #tpu.memory_space<vmem>>, %arg5: memref<64x32xf32, #tpu.memory_space<vmem>>) attributes {dimension_semantics = [#tpu.dimension_semantics<parallel>, #tpu.dimension_semantics<parallel>], iteration_bounds = array<i64: 1, 1>, scalar_prefetch = 0 : i64, scratch_operands = 0 : i64, tpu.core_type = #tpu.core_type<tc>, window_params = [{transform_indices = @transform_0, window_bounds = array<i64: 8, 10, 24>}, {transform_indices = @transform_1, window_bounds = array<i64: 3, 24, 32>}, {transform_indices = @transform_2, window_bounds = array<i64: 1, 32>}, {transform_indices = @transform_3, window_bounds = array<i64: 64, 32>}]} {
    %c0 = arith.constant 0 : index
    %c0_0 = arith.constant 0 : index
    %c0_1 = arith.constant 0 : index
    %0 = vector.load %arg2[%c0, %c0_0, %c0_1] : memref<8x10x24xbf16, #tpu.memory_space<vmem>>, vector<8x8x24xbf16>
    %1 = vector.shape_cast %0 : vector<8x8x24xbf16> to vector<64x24xbf16>
    %c0_2 = arith.constant 0 : index
    %c0_3 = arith.constant 0 : index
    %c0_4 = arith.constant 0 : index
    %2 = vector.load %arg3[%c0_2, %c0_3, %c0_4] : memref<3x24x32xbf16, #tpu.memory_space<vmem>>, vector<1x24x32xbf16>
    %3 = vector.shape_cast %2 : vector<1x24x32xbf16> to vector<24x32xbf16>
    %cst = arith.constant dense<0.000000e+00> : vector<64x32xf32>
    %4 = tpu.matmul %1, %3, %cst {dimension_numbers = #tpu.dot_dimension_numbers<[1], [0], [0], [1], [0, 0, 1, 1], [], []>} : vector<64x24xbf16>, vector<24x32xbf16>, vector<64x32xf32> -> vector<64x32xf32>
    %c0_5 = arith.constant 0 : index
    %c1 = arith.constant 1 : index
    %c0_6 = arith.constant 0 : index
    %5 = vector.load %arg2[%c0_5, %c1, %c0_6] : memref<8x10x24xbf16, #tpu.memory_space<vmem>>, vector<8x8x24xbf16>
    %6 = vector.shape_cast %5 : vector<8x8x24xbf16> to vector<64x24xbf16>
    %c1_7 = arith.constant 1 : index
    %c0_8 = arith.constant 0 : index
    %c0_9 = arith.constant 0 : index
    %7 = vector.load %arg3[%c1_7, %c0_8, %c0_9] : memref<3x24x32xbf16, #tpu.memory_space<vmem>>, vector<1x24x32xbf16>
    %8 = vector.shape_cast %7 : vector<1x24x32xbf16> to vector<24x32xbf16>
    %cst_10 = arith.constant dense<0.000000e+00> : vector<64x32xf32>
    %9 = tpu.matmul %6, %8, %cst_10 {dimension_numbers = #tpu.dot_dimension_numbers<[1], [0], [0], [1], [0, 0, 1, 1], [], []>} : vector<64x24xbf16>, vector<24x32xbf16>, vector<64x32xf32> -> vector<64x32xf32>
    %10 = arith.addf %4, %9 : vector<64x32xf32>
    %c0_11 = arith.constant 0 : index
    %c2 = arith.constant 2 : index
    %c0_12 = arith.constant 0 : index
    %11 = vector.load %arg2[%c0_11, %c2, %c0_12] : memref<8x10x24xbf16, #tpu.memory_space<vmem>>, vector<8x8x24xbf16>
    %12 = vector.shape_cast %11 : vector<8x8x24xbf16> to vector<64x24xbf16>
    %c2_13 = arith.constant 2 : index
    %c0_14 = arith.constant 0 : index
    %c0_15 = arith.constant 0 : index
    %13 = vector.load %arg3[%c2_13, %c0_14, %c0_15] : memref<3x24x32xbf16, #tpu.memory_space<vmem>>, vector<1x24x32xbf16>
    %14 = vector.shape_cast %13 : vector<1x24x32xbf16> to vector<24x32xbf16>
    %cst_16 = arith.constant dense<0.000000e+00> : vector<64x32xf32>
    %15 = tpu.matmul %12, %14, %cst_16 {dimension_numbers = #tpu.dot_dimension_numbers<[1], [0], [0], [1], [0, 0, 1, 1], [], []>} : vector<64x24xbf16>, vector<24x32xbf16>, vector<64x32xf32> -> vector<64x32xf32>
    %16 = arith.addf %10, %15 : vector<64x32xf32>
    %c0_17 = arith.constant 0 : index
    %c0_18 = arith.constant 0 : index
    %17 = vector.load %arg4[%c0_17, %c0_18] : memref<1x32xf32, #tpu.memory_space<vmem>>, vector<1x32xf32>
    %18 = vector.broadcast %17 : vector<1x32xf32> to vector<64x32xf32>
    %19 = arith.addf %16, %18 : vector<64x32xf32>
    %c0_19 = arith.constant 0 : index
    %c0_20 = arith.constant 0 : index
    %20 = vector.load %arg5[%c0_19, %c0_20] : memref<64x32xf32, #tpu.memory_space<vmem>>, vector<64x32xf32>
    tpu.vector_store %arg5[%c0_19, %c0_20], %19 {strides = array<i32>} : memref<64x32xf32, #tpu.memory_space<vmem>>, vector<64x32xf32>,
    return
  }
  func.func @transform_0(%arg0: i32, %arg1: i32) -> (i32, i32, i32) {
    %c0_i32 = arith.constant 0 : i32
    %c0_i32_0 = arith.constant 0 : i32
    %c0_i32_1 = arith.constant 0 : i32
    return %arg0, %c0_i32, %c0_i32_0 : i32, i32, i32
  }
  func.func @transform_1(%arg0: i32, %arg1: i32) -> (i32, i32, i32) {
    %c0_i32 = arith.constant 0 : i32
    %c0_i32_0 = arith.constant 0 : i32
    %c0_i32_1 = arith.constant 0 : i32
    return %c0_i32, %c0_i32_0, %arg1 : i32, i32, i32
  }
  func.func @transform_2(%arg0: i32, %arg1: i32) -> (i32, i32) {
    %c0_i32 = arith.constant 0 : i32
    %c0_i32_0 = arith.constant 0 : i32
    return %c0_i32, %arg1 : i32, i32
  }
  func.func @transform_3(%arg0: i32, %arg1: i32) -> (i32, i32) {
    %c0_i32 = arith.constant 0 : i32
    return %arg0, %arg1 : i32, i32
  }
}

</mosaic_0001>

<bundles_post_ra>
// kernel: tpu_custom_call.1
= control target key start
LH: loop header
LB: loop body
LE: loop exit
PB: predicated region body
PF: predicated region fallthrough
CT: control target
= control target key end

     0   :  { %vm34_vm0 = vsmask.f32 3328  ;;  %vm35_vm1 = vsmask.f32 7440  ;;  %vm187_vm2 = vcmask 1043456   ;;  %vm174_vm3 = vcmask 195584   ;;  %s981_s1 = inlined_call_operand.vmem [shape: bf16[3,24,32], index: 1, kind: input, shape index: {}]   ;;  %s982_s0 = inlined_call_operand.vmem [shape: bf16[8,10,24], index: 0, kind: input, shape index: {}]   ;;  %s983_s2 = inlined_call_operand.vmem [shape: f32[1,32], index: 2, kind: input, shape index: {}]   ;;  %s984_s3 = inlined_call_operand.vmem [shape: f32[64,32], index: 3, kind: output, shape index: {}]  }
   0x1   :  { %v721_v0 = vld [vmem:[%s981_s1] sm:$0xff]   ;;  %v689_v1 = vld [vmem:[%s981_s1 + $0xc] sm:$0xff]   ;;  %v730_v2 = vld [vmem:[%s981_s1 + $0x8] ss:$0 sps:$4 sm:$0xff]   ;;  %vm389_vm5 = vcmask 1042432   ;;  %vm390_vm6 = vcmask 1046532  }
   0x2   :  { %640 = vmatprep.subr.bf16.mxu0 %v721_v0  ;;  %628 = vmatprep.subr.bf16.mxu1 %v689_v1  ;;  %v691_v3 = vld [vmem:[%s981_s1 + $0x14] ss:$0 sps:$4 sm:$0xff]   ;;  %v15_v4 = vld [vmem:[%s982_s0] sm:$0xf]  ;;  %v16_v5 = vld [vmem:[%s982_s0 + $0x8] sm:$0xf] }
   0x3   :  { %641 = vmatpush3.bf16.msra.mxu0 %v721_v0  ;;  %629 = vmatpush3.bf16.msra.mxu1 %v689_v1  ;;  %v746_v6 = vsel %vm187_vm2, %v730_v2, 0  ;;  %v38_v7 = vshrl.u32 %v15_v4, 16  ;;  %v41_v8 = vshll.u32 %v15_v4, 16  ;;  %v52_v9 = vshrl.u32 %v16_v5, 16  ;;  %v17_v10 = vld [vmem:[%s982_s0 + $0x10] sm:$0xf]  ;;  %vm774_vm4 = vmor %vm34_vm0, %vm35_vm1 }
   0x4   :  { %685 = vmatprep.subr.msk.bf16.mxu0 %vm187_vm2, %v730_v2  ;;  %684 = vmatprep.subr.msk.bf16.mxu1 %vm187_vm2, %v691_v3  ;;  %v189_v11 = vsel %vm187_vm2, %v691_v3, 0  ;;  %v55_v12 = vshll.u32 %v16_v5, 16  ;;  %v578_v13 = vcombine.low %v15_v4, %v16_v5  ;;  %v18_v14 = vld [vmem:[%s982_s0 + $0x18] sm:$0xf]  ;;  %v66_v15 = vshrl.u32 %v17_v10, 16  ;;  %vm875_vm7 = vmor %vm389_vm5, %vm390_vm6 }
   0x5   :  { %v694_v16 = vld [vmem:[%s981_s1 + $0x18] sm:$0xff]   ;;  %v40_v17 = vrot.slane %v38_v7, 4  ;;  %v43_v18 = vrot.slane %v41_v8, 5  ;;  %v54_v19 = vrot.slane %v52_v9, 4  ;;  %v69_v20 = vshll.u32 %v17_v10, 16 }
   0x6   :  { %v762_v21 = vld [vmem:[%s982_s0 + $0x4] sm:$0x1]  ;;  %v57_v22 = vrot.slane %v55_v12, 5  ;;  %644 = vmatprep.mubr.msk.bf16.mxu0 %vm174_vm3, %v578_v13  ;;  %v68_v23 = vrot.slane %v66_v15, 4  ;;  %v80_v24 = vshrl.u32 %v18_v14, 16  ;;  %v83_v25 = vshll.u32 %v18_v14, 16 }
   0x7   :  { %643 = vmatpush3.bf16.msra.mxu0 %v746_v6  ;;  %v769_v26 = vld [vmem:[%s982_s0 + $0xc] sm:$0x1]  ;;  %631 = vmatpush3.bf16.msra.mxu1 %v189_v11  ;;  %v71_v27 = vrot.slane %v69_v20, 5  ;;  %v579_v28 = vcombine.low %v17_v10, %v18_v14  ;;  %v44_v29 = vor.u32 %v43_v18, %v40_v17  ;;  %v47_v30 = vshll.u32 %v762_v21, 16  ;;  %v783_v36 = vld [vmem:[%s982_s0 + $0x14] sm:$0x1] }
   0x8   :  { %652 = vmatprep.subr.bf16.mxu0 %v694_v16  ;;  %v82_v31 = vrot.slane %v80_v24, 4  ;;  %v85_v32 = vrot.slane %v83_v25, 5  ;;  %v58_v34 = vor.u32 %v57_v22, %v54_v19  ;;  %v61_v35 = vshll.u32 %v769_v26, 16  ;;  %664 = vmatprep.subr.bf16.mxu1 %v721_v0  ;;  %v791_v41 = vld [vmem:[%s982_s0 + $0x1c] sm:$0x1] }
   0x9   :  { %v45_v37 = vrot.slane %v44_v29, 4  ;;  %v49_v38 = vrot.slane %v47_v30, 5  ;;  %v394_v39 = vrot.slane %v762_v21, 5  ;;  %v398_v40 = vrot.slane %v769_v26, 5  ;;  %v695_v50 = vld [vmem:[%s981_s1 + $0x20] ss:$0 sps:$4 sm:$0xff]  }
   0xa   :  { %645 = vmatmul.mubr.msk.bf16.vlgmr.msra.gmra.mrb[0].mxu0 %vm174_vm3, %v579_v28  ;;  %v59_v42 = vrot.slane %v58_v34, 4  ;;  %v63_v43 = vrot.slane %v61_v35, 5  ;;  %v72_v44 = vor.u32 %v71_v27, %v68_v23  ;;  %v75_v45 = vshll.u32 %v783_v36, 16  ;;  %v804_v51 = vld [vmem:[%s982_s0 + $0x20] sm:$0xf] }
   0xb   :  { %653 = vmatpush3.bf16.msra.mxu0 %v694_v16  ;;  %v50_v46 = vsel %vm774_vm4, %v45_v37, %v49_v38  ;;  %v86_v47 = vor.u32 %v85_v32, %v82_v31  ;;  %v89_v48 = vshll.u32 %v791_v41, 16  ;;  %v402_v49 = vrot.slane %v783_v36, 5  ;;  %v812_v56 = vld [vmem:[%s982_s0 + $0x28] sm:$0xf]  ;;  %v819_v61 = vld [vmem:[%s982_s0 + $0x24] sm:$0x1] }
   0xc   :  { %v64_v52 = vsel %vm774_vm4, %v59_v42, %v63_v43  ;;  %v73_v53 = vrot.slane %v72_v44, 4  ;;  %v77_v54 = vrot.slane %v75_v45, 5  ;;  %v406_v55 = vrot.slane %v791_v41, 5  ;;  %687 = vmatprep.subr.msk.bf16.mxu0 %vm187_vm2, %v695_v50  ;;  %v826_v63 = vld [vmem:[%s982_s0 + $0x2c] sm:$0x1] }
   0xd   :  { %v568_v57 = vcombine.low %v50_v46, %v64_v52  ;;  %v87_v58 = vrot.slane %v86_v47, 4  ;;  %v91_v59 = vrot.slane %v89_v48, 5  ;;  %v462_v60 = vsel %vm187_vm2, %v695_v50, 0  ;;  %v840_v10 = vld [vmem:[%s982_s0 + $0x30] sm:$0xf] }
   0xe   :  { %v78_v62 = vsel %vm774_vm4, %v73_v53, %v77_v54  ;;  %v94_v1 = vshrl.u32 %v804_v51, 16  ;;  %v97_v3 = vshll.u32 %v804_v51, 16  ;;  %v103_v4 = vshll.u32 %v819_v61, 16  ;;  %v845_v15 = vld [vmem:[%s982_s0 + $0x38] sm:$0xf] }
   0xf   :  { %655 = vmatpush3.bf16.msra.mxu0 %v462_v60  ;;  %632 = vmatprep.mubr.msk.bf16.mxu1 %vm174_vm3, %v568_v57  ;;  %v92_v5 = vsel %vm774_vm4, %v87_v58, %v91_v59  ;;  %v108_v7 = vshrl.u32 %v812_v56, 16  ;;  %v111_v8 = vshll.u32 %v812_v56, 16  ;;  %v117_v9 = vshll.u32 %v826_v63, 16  ;;  %v850_v19 = vld [vmem:[%s982_s0 + $0x34] sm:$0x1] }
  0x10   :  { %v569_v11 = vcombine.low %v78_v62, %v92_v5  ;;  %v96_v12 = vrot.slane %v94_v1, 4  ;;  %v99_v13 = vrot.slane %v97_v3, 5  ;;  %v105_v14 = vrot.slane %v103_v4, 5  ;;  %v857_v23 = vld [vmem:[%s982_s0 + $0x3c] sm:$0x1] }
  0x11   :  { %v110_v16 = vrot.slane %v108_v7, 4  ;;  %v113_v17 = vrot.slane %v111_v8, 5  ;;  %v119_v18 = vrot.slane %v117_v9, 5  ;;  %v122_v20 = vshrl.u32 %v840_v10, 16  ;;  %v365_v32 = vld [vmem:[%s982_s0] sm:$0xe] }
  0x12   :  { %633 = vmatmul.mubr.msk.bf16.vlgmr.msra.gmra.mrb[0].mxu1 %vm174_vm3, %v569_v11  ;;  %v100_v22 = vor.u32 %v99_v13, %v96_v12  ;;  %v125_v24 = vshll.u32 %v840_v10, 16  ;;  %v131_v25 = vshll.u32 %v850_v19, 16  ;;  %v136_v27 = vshrl.u32 %v845_v15, 16  ;;  %v367_v47 = vld [vmem:[%s982_s0 + $0x10] sm:$0xe] }
  0x13   :  { %666 = vmatpush3.bf16.msra.mxu1 %v721_v0  ;;  %v114_v28 = vor.u32 %v113_v17, %v110_v16  ;;  %v124_v29 = vrot.slane %v122_v20, 4  ;;  %v139_v30 = vshll.u32 %v845_v15, 16  ;;  %v145_v31 = vshll.u32 %v857_v23, 16  ;;  %v366_v0 = vld [vmem:[%s982_s0 + $0x8] sm:$0xe] }
  0x14   :  { %v101_v34 = vrot.slane %v100_v22, 4  ;;  %v127_v35 = vrot.slane %v125_v24, 5  ;;  %v133_v37 = vrot.slane %v131_v25, 5  ;;  %v138_v38 = vrot.slane %v136_v27, 4  ;;  %686 = vmatprep.subr.msk.bf16.mxu1 %vm187_vm2, %v730_v2  ;;  %v368_v52 = vld [vmem:[%s982_s0 + $0x18] sm:$0xe] }
  0x15   :  { %v115_v43 = vrot.slane %v114_v28, 4  ;;  %v141_v44 = vrot.slane %v139_v30, 5  ;;  %v147_v45 = vrot.slane %v145_v31, 5  ;;  %v588_v46 = vrot.slane %v365_v32, 9  ;;  %v369_v54 = vld [vmem:[%s982_s0 + $0x20] sm:$0xe] }
  0x16   :  { %v106_v2 = vsel %vm774_vm4, %v101_v34, %v105_v14  ;;  %v128_v48 = vor.u32 %v127_v35, %v124_v29  ;;  %v589_v50 = vrot.slane %v366_v0, 9  ;;  %v590_v53 = vrot.slane %v367_v47, 9  ;;  %v370_v62 = vld [vmem:[%s982_s0 + $0x28] sm:$0xe]  ;;  %v609_v27 = vld [vmem:[%s983_s2] ss:$0 sm:$0xff] }
  0x17   :  { %v120_v57 = vsel %vm774_vm4, %v115_v43, %v119_v18  ;;  %v142_v58 = vor.u32 %v141_v44, %v138_v38  ;;  %v395_v59 = vsel %vm875_vm7, %v588_v46, %v394_v39  ;;  %667 = vmatpush3.bf16.msra.mxu1 %v746_v6  ;;  %v591_v60 = vrot.slane %v368_v52, 9  ;;  %v371_v6 = vld [vmem:[%s982_s0 + $0x30] sm:$0xe] }
  0x18   :  { %v570_v1 = vcombine.low %v106_v2, %v120_v57  ;;  %v129_v3 = vrot.slane %v128_v48, 4  ;;  %v399_v4 = vsel %vm875_vm7, %v589_v50, %v398_v40  ;;  %v403_v21 = vsel %vm875_vm7, %v590_v53, %v402_v49  ;;  %v372_v40 = vld [vmem:[%s982_s0 + $0x38] sm:$0xe] }
  0x19   :  { %v143_v39 = vrot.slane %v142_v58, 4  ;;  %v599_v5 = vcombine.low %v395_v59, %v399_v4  ;;  %v407_v7 = vsel %vm875_vm7, %v591_v60, %v406_v55  ;;  %v592_v26 = vrot.slane %v369_v54, 9 }
  0x1a   :  { %636 = vmatprep.mubr.msk.bf16.mxu1 %vm174_vm3, %v570_v1  ;;  %v134_v36 = vsel %vm774_vm4, %v129_v3, %v133_v37  ;;  %v600_v49 = vcombine.low %v403_v21, %v407_v7  ;;  %v410_v8 = vrot.slane %v819_v61, 5  ;;  %v593_v9 = vrot.slane %v370_v62, 9 }
  0x1b   :  { %v148_v41 = vsel %vm774_vm4, %v143_v39, %v147_v45  ;;  %656 = vmatprep.mubr.msk.bf16.mxu0 %vm174_vm3, %v599_v5  ;;  %v414_v55 = vrot.slane %v826_v63, 5  ;;  %v594_v11 = vrot.slane %v371_v6, 9  ;;  %v418_v12 = vrot.slane %v850_v19, 5 }
  0x1c   :  { %v571_v13 = vcombine.low %v134_v36, %v148_v41  ;;  %657 = vmatmul.mubr.msk.bf16.vlgmr.msra.gmra.mrb[0].mxu0 %vm174_vm3, %v600_v49  ;;  %v411_v14 = vsel %vm875_vm7, %v592_v26, %v410_v8  ;;  %v595_v16 = vrot.slane %v372_v40, 9  ;;  %v422_v61 = vrot.slane %v857_v23, 5 }
  0x1d   :  { %v415_v33 = vsel %vm875_vm7, %v593_v9, %v414_v55  ;;  %v419_v17 = vsel %vm875_vm7, %v594_v11, %v418_v12  ;;  %v580_v63 = vcombine.low %v804_v51, %v812_v56  ;;  %v581_v22 = vcombine.low %v840_v10, %v845_v15 }
  0x1e   :  { %637 = vmatmul.mubr.msk.bf16.gmra.mrb[4].mxu1 %vm174_vm3, %v571_v13  ;;  %v601_v18 = vcombine.low %v411_v14, %v415_v33  ;;  %v423_v19 = vsel %vm875_vm7, %v595_v16, %v422_v61  ;;  %vm552_vm8 = vcmask 261120  }
  0x1f   :  { %648 = vmatprep.mubr.msk.bf16.mxu1 %vm174_vm3, %v580_v63  ;;  %v602_v20 = vcombine.low %v419_v17, %v423_v19 }
  0x20   :  { %660 = vmatprep.mubr.msk.bf16.mxu0 %vm174_vm3, %v601_v18 }
  0x24   :  { %661 = vmatmul.mubr.msk.bf16.gmra.mrb[4].mxu0 %vm174_vm3, %v602_v20 }
  0x2a   :  { %649 = vmatmul.mubr.msk.bf16.vlgmr.msra.gmra.mrb[4].mxu1 %vm174_vm3, %v581_v22 }
  0xe5   :  { %v634_v23 = vpop.f32.mrb[0].mxu1 }
  0xe6   :  { %v225_v51 = vpop.f32.mrb[1].mxu1 }
  0xe7   :  { %v635_v56 = vpop.f32.mrb[2].mxu1 }
  0xe8   :  { %v228_v24 = vpop.f32.mrb[3].mxu1 }
  0xef   :  { %v658_v25 = vpop.f32.mrb[0].mxu0 }
  0xf0   :  { %v668_v28 = vadd.f32 %v658_v25, %v634_v23  ;;  %v498_v29 = vpop.f32.mrb[1].mxu0 }
  0xf1   :  { %v669_v30 = vadd.f32 %v498_v29, %v225_v51  ;;  %v659_v31 = vpop.f32.mrb[2].mxu0 }
  0xf2   :  { %v546_v32 = vadd.f32 %v668_v28, %v609_v27  ;;  %v670_v34 = vadd.f32 %v659_v31, %v635_v56  ;;  %v501_v35 = vpop.f32.mrb[3].mxu0 }
  0xf3   :  { %v544_v10 = vadd.f32 %v669_v30, %v609_v27  ;;  %v671_v15 = vadd.f32 %v501_v35, %v228_v24 }
  0xf4   :  { %555 = vst.msk [vmem:[%s984_s3 + $0x10] sm:$0xff] %vm552_vm8, %v546_v32  ;;  %v547_v37 = vadd.f32 %v670_v34, %v609_v27 }
  0xf5   :  { %553 = vst.msk [vmem:[%s984_s3] sm:$0xff] %vm552_vm8, %v544_v10  ;;  %v545_v38 = vadd.f32 %v671_v15, %v609_v27 }
  0xf6   :  { %556 = vst.msk [vmem:[%s984_s3 + $0x18] sm:$0xff] %vm552_vm8, %v547_v37 }
  0xf7   :  { %554 = vst.msk [vmem:[%s984_s3 + $0x8] sm:$0xff] %vm552_vm8, %v545_v38  ;;  %v662_v0 = vpop.f32.mrb[4].mxu0 }
  0xf8   :  { %v514_v42 = vpop.f32.mrb[5].mxu0 }
  0xf9   :  { %v663_v43 = vpop.f32.mrb[6].mxu0 }
  0xfa   :  { %v517_v44 = vpop.f32.mrb[7].mxu0 }
  0xfd   :  { %v650_v45 = vpop.f32.mrb[4].mxu1 }
  0xfe   :  { %v672_v46 = vadd.f32 %v662_v0, %v650_v45  ;;  %v350_v47 = vpop.f32.mrb[5].mxu1 }
  0xff   :  { %v673_v2 = vadd.f32 %v514_v42, %v350_v47  ;;  %v651_v48 = vpop.f32.mrb[6].mxu1 }
 0x100   :  { %v550_v50 = vadd.f32 %v672_v46, %v609_v27  ;;  %v674_v52 = vadd.f32 %v663_v43, %v651_v48  ;;  %v353_v53 = vpop.f32.mrb[7].mxu1 }
 0x101   :  { %v548_v54 = vadd.f32 %v673_v2, %v609_v27  ;;  %v675_v57 = vadd.f32 %v517_v44, %v353_v53 }
 0x102   :  { %559 = vst.msk [vmem:[%s984_s3 + $0x30] sm:$0xff] %vm552_vm8, %v550_v50  ;;  %v551_v58 = vadd.f32 %v674_v52, %v609_v27 }
 0x103   :  { %557 = vst.msk [vmem:[%s984_s3 + $0x20] sm:$0xff] %vm552_vm8, %v548_v54  ;;  %v549_v59 = vadd.f32 %v675_v57, %v609_v27 }
 0x104   :  { %560 = vst.msk [vmem:[%s984_s3 + $0x38] sm:$0xff] %vm552_vm8, %v551_v58 }
 0x105   :  { %558 = vst.msk [vmem:[%s984_s3 + $0x28] sm:$0xff] %vm552_vm8, %v549_v59 }

</bundles_post_ra>
